<compile_context>
chip_gen: v5e
topology: v5e:2x2
jax: 0.10.0
libtpu: 0.0.40
codegen_flags: <defaults>
</compile_context>

<pallas_src>
import functools

import jax
import jax.numpy as jnp
from jax.experimental import pallas as pl
from jax.experimental.pallas import tpu as pltpu


def _round_up(v, m):
    return (v + m - 1) // m * m


def _largest_divisor_leq(v, cap):
    cap = max(1, min(v, cap))
    for d in range(cap, 0, -1):
        if v % d == 0:
            return d
    return 1


# ---------------------------------------------------------------------------
# Pass 1: M-tiled space-to-depth conv (bf16 MXU matmuls, f32 accumulation)
#         + per-tile partial BatchNorm statistics.
# ---------------------------------------------------------------------------
def _conv_stats_kernel(xm_ref, xe_ref, w_ref, y_ref, sum_ref, ssq_ref, *,
                       tr, wo, c4, fold_k):
    # s2d rows [j*tr, j*tr + tr] for this tile (main block + 1 overlap row).
    x_full = jnp.concatenate([xm_ref[0], xe_ref[0]], axis=0)    # (tr+1, wp, c4)
    patches = []
    for dh, dw in ((0, 0), (0, 1), (1, 0), (1, 1)):
        p = x_full[dh:dh + tr, dw:dw + wo, :]                    # (tr, wo, c4)
        patches.append(p.reshape(tr * wo, c4))
    if fold_k:
        # Small C_in: one dot with K = 16*C_in (better MXU depth utilization,
        # accumulation happens in the MXU instead of three VALU slab adds).
        patch = jnp.concatenate(patches, axis=-1)                # (tr*wo, 4*c4)
        acc = jnp.dot(patch, w_ref[...], preferred_element_type=jnp.float32)
    else:
        acc = None
        for t in range(4):
            part = jnp.dot(patches[t], w_ref[t],
                           preferred_element_type=jnp.float32)
            acc = part if acc is None else acc + part
    y_ref[...] = acc.astype(y_ref.dtype)                         # bf16 intermediate
    c = acc.shape[1]
    # Partial BN stats for this tile (f32, taken before the bf16 round).
    sum_ref[...] = jnp.sum(acc, axis=0).reshape(1, 1, c)
    ssq_ref[...] = jnp.sum(acc * acc, axis=0).reshape(1, 1, c)


# ---------------------------------------------------------------------------
# Pass 2: y * scale + shift -> activation -> optional dropout.  M-tiled.
# ---------------------------------------------------------------------------
def _bn_act_kernel(*refs, negative_slope, use_dropout):
    if use_dropout:
        y_ref, scale_ref, shift_ref, mask_ref, out_ref = refs
    else:
        y_ref, scale_ref, shift_ref, out_ref = refs
    y = y_ref[...].astype(jnp.float32) * scale_ref[...] + shift_ref[...]
    if negative_slope == 0.0:                                    # ReLU
        y = jnp.maximum(y, 0.0)
    else:                                                        # LeakyReLU(0.2)
        y = jnp.where(y >= 0.0, y, negative_slope * y)
    if use_dropout:
        # keep-mask in {0,1}; p(keep) = 0.5, scaled by 1/(1-p) = 2.
        y = y * (mask_ref[...].astype(jnp.float32) * 2.0)
    out_ref[...] = y.astype(out_ref.dtype)


def prepare_conv_weight(weight, c_out_p, fold_k):
    """OIHW (C_out, C_in, 4, 4) -> space-to-depth taps, lane-padded, bf16.
    In a full U-Net this is computed once per layer and cached, not per step."""
    c_out, c_in = weight.shape[0], weight.shape[1]
    c4 = 4 * c_in
    w_r = weight.reshape(c_out, c_in, 2, 2, 2, 2)        # (o, c, dh, a, dw, b)
    w_t = w_r.transpose(2, 4, 3, 5, 1, 0)                # (dh, dw, a, b, c, o)
    w_s2d = w_t.reshape(4, c4, c_out)
    w_s2d = jnp.pad(w_s2d, ((0, 0), (0, 0), (0, c_out_p - c_out)))
    if fold_k:
        w_s2d = w_s2d.reshape(4 * c4, c_out_p)
    return w_s2d.astype(jnp.bfloat16)


def block_forward(x, weight, gamma, beta, *, act="relu", use_dropout=False,
                  eps=1e-5, dropout_seed=0, channels_last=False):
    """x: (N, C_in, H, W) float32 (NCHW, like PyTorch).
       weight: (C_out, C_in, 4, 4) PyTorch Conv2d OIHW layout, bias-free.
       gamma/beta: (C_out,) BatchNorm2d affine parameters."""
    n, c_in, h, w = x.shape
    c_out = weight.shape[0]
    assert h % 2 == 0 and w % 2 == 0, "Conv2d(k=4,s=2,p=1) path needs even H/W"
    ho, wo = h // 2, w // 2
    hp, wp = ho + 1, wo + 1                 # space-to-depth dims of padded x
    c4 = 4 * c_in
    c_out_p = _round_up(c_out, 128)         # lane-dense output channels
    m = n * ho * wo

    # ---- JAX-side layout prep (~1x of x; no im2col blow-up) ----------------
    # TODO(synk): in a full U-Net keep activations NHWC between blocks and
    #             fold this transpose/pad/cast into the neighbouring block.
    x_nhwc = jnp.transpose(x, (0, 2, 3, 1))
    x_pad = jnp.pad(x_nhwc, ((0, 0), (1, 1), (1, 1), (0, 0)))
    x_s2d = x_pad.reshape(n, hp, 2, wp, 2, c_in)
    x_s2d = x_s2d.transpose(0, 1, 3, 2, 4, 5).reshape(n, hp, wp, c4)
    x_s2d = x_s2d.astype(jnp.bfloat16)

    fold_k = c4 < 256          # small C_in: fold all 4 taps into one K=16*C_in
    w_s2d = prepare_conv_weight(weight, c_out_p, fold_k)

    # ---- Pass-1 row tiling: bound f32 accumulator + double-buffered blocks -
    per_row_bytes = wo * c_out_p * (4 + 2 * 2) + 2 * wp * c4 * 2
    max_tr = max(1, (8 << 20) // per_row_bytes)
    tr = _largest_divisor_leq(ho, max_tr)
    if (tr * wo) % 16 != 0:
        # TODO(synk): pathological tiny spatial dims; fall back to per-image
        #             blocks rather than fighting sublane alignment.
        tr = ho
    n_rt = ho // tr
    rows_per_tile = tr * wo

    # ---- Pass-2 tiling: large robust tiles (pad M; never the tm=M fallback) -
    tm2 = 512 if m >= 512 else _round_up(m, 16)
    m_p = _round_up(m, tm2)

    # ---- Pass 1: conv (MXU) + per-tile partial BN stats ---------------------
    w_bytes = 4 * c4 * c_out_p * 2
    vmem1 = 2 * (tr * wp * c4 * 2 + wp * c4 * 2 + w_bytes
                 + rows_per_tile * c_out_p * 2 + 2 * c_out_p * 4)
    vmem1 += rows_per_tile * c_out_p * 4            # live f32 accumulator
    vmem1 = int(min(64 << 20, max(16 << 20, vmem1 + (4 << 20))))
    flops1 = 2 * m * (4 * c4) * c_out_p
    bytes1 = (x_s2d.size * 2 + w_s2d.size * 2 + m * c_out_p * 2
              + 2 * n * n_rt * c_out_p * 4)

    if fold_k:
        w_spec = pl.BlockSpec((4 * c4, c_out_p), lambda b, j: (0, 0))
    else:
        w_spec = pl.BlockSpec((4, c4, c_out_p), lambda b, j: (0, 0, 0))

    y_raw, bn_sum, bn_ssq = pl.pallas_call(
        functools.partial(_conv_stats_kernel, tr=tr, wo=wo, c4=c4,
                          fold_k=fold_k),
        out_shape=(jax.ShapeDtypeStruct((m_p, c_out_p), jnp.bfloat16),
                   jax.ShapeDtypeStruct((n * n_rt, 1, c_out_p), jnp.float32),
                   jax.ShapeDtypeStruct((n * n_rt, 1, c_out_p), jnp.float32)),
        grid_spec=pltpu.PrefetchScalarGridSpec(
            num_scalar_prefetch=0,
            grid=(n, n_rt),
            in_specs=[
                # main s2d rows [j*tr, j*tr+tr)
                pl.BlockSpec((1, tr, wp, c4), lambda b, j: (b, j, 0, 0)),
                # one overlap row (j+1)*tr  (block size 1 => element index)
                pl.BlockSpec((1, 1, wp, c4),
                             lambda b, j: (b, (j + 1) * tr, 0, 0)),
                w_spec,
            ],
            out_specs=(
                pl.BlockSpec((rows_per_tile, c_out_p),
                             lambda b, j: (b * n_rt + j, 0)),
                pl.BlockSpec((1, 1, c_out_p), lambda b, j: (b * n_rt + j, 0, 0)),
                pl.BlockSpec((1, 1, c_out_p), lambda b, j: (b * n_rt + j, 0, 0)),
            )),
        compiler_params=pltpu.CompilerParams(
            dimension_semantics=("parallel", "parallel"),
            vmem_limit_bytes=vmem1),
        cost_estimate=pl.CostEstimate(flops=flops1, transcendentals=0,
                                      bytes_accessed=bytes1),
    )(x_s2d, x_s2d, w_s2d)

    # ---- Finalize BN statistics (O(C_out) work; plain JAX) ------------------
    mean = jnp.sum(bn_sum, axis=(0, 1)) / m                  # (C_out_p,)
    ex2 = jnp.sum(bn_ssq, axis=(0, 1)) / m
    var = ex2 - mean * mean     # TODO(synk): Welford/centered if cancellation bites
    inv_std = jax.lax.rsqrt(var + eps)
    gamma_p = jnp.pad(gamma.astype(jnp.float32), (0, c_out_p - c_out))
    beta_p = jnp.pad(beta.astype(jnp.float32), (0, c_out_p - c_out))
    scale = (gamma_p * inv_std).reshape(1, c_out_p)
    shift = (beta_p - mean * gamma_p * inv_std).reshape(1, c_out_p)

    # ---- Pass 2: normalize + activation (+ dropout), M-tiled ----------------
    negative_slope = 0.0 if act == "relu" else 0.2

    in_specs2 = [
        pl.BlockSpec((tm2, c_out_p), lambda i: (i, 0)),
        pl.BlockSpec((1, c_out_p), lambda i: (0, 0)),
        pl.BlockSpec((1, c_out_p), lambda i: (0, 0)),
    ]
    args2 = [y_raw, scale, shift]
    if use_dropout:
        # TODO(synk): on TPU-only builds, use pltpu.prng_seed/prng_random_bits
        #             in-kernel instead of streaming a mask; the host-side mask
        #             keeps the kernel runnable in interpret mode (prng_seed
        #             has no CPU lowering).
        keep = jax.random.bernoulli(jax.random.PRNGKey(dropout_seed), 0.5,
                                    (m_p, c_out_p))
        args2.append(keep.astype(jnp.bfloat16))
        in_specs2.append(pl.BlockSpec((tm2, c_out_p), lambda i: (i, 0)))

    vmem2 = 2 * (tm2 * c_out_p * (2 + 4 + (2 if use_dropout else 0))
                 + 2 * c_out_p * 4)
    vmem2 = int(min(64 << 20, max(16 << 20, vmem2 + (4 << 20))))
    flops2 = 4 * m_p * c_out_p
    bytes2 = (m_p * c_out_p * (2 + 4 + (2 if use_dropout else 0))
              + 2 * c_out_p * 4)

    out_p = pl.pallas_call(
        functools.partial(_bn_act_kernel, negative_slope=negative_slope,
                          use_dropout=use_dropout),
        out_shape=jax.ShapeDtypeStruct((m_p, c_out_p), x.dtype),
        grid_spec=pltpu.PrefetchScalarGridSpec(
            num_scalar_prefetch=0,
            grid=(m_p // tm2,),
            in_specs=in_specs2,
            out_specs=pl.BlockSpec((tm2, c_out_p), lambda i: (i, 0))),
        compiler_params=pltpu.CompilerParams(
            dimension_semantics=("parallel",),
            vmem_limit_bytes=vmem2),
        cost_estimate=pl.CostEstimate(flops=flops2, transcendentals=0,
                                      bytes_accessed=bytes2),
    )(*args2)

    # (M_p, C_out_p) -> (N, Ho, Wo, C_out).  NHWC is the preferred inter-block
    # layout; NCHW transpose only to match the PyTorch module's convention.
    out = out_p[:m, :c_out].reshape(n, ho, wo, c_out)
    if channels_last:
        return out
    return out.transpose(0, 3, 1, 2)


def _reference(x, weight, gamma, beta, eps=1e-5, negative_slope=0.0):
    """Pure-JAX reference: conv (bf16 inputs, f32 accumulation — same MXU
    precision as the kernel), bf16 intermediate like the kernel, then
    training-mode BN -> ReLU / LeakyReLU."""
    y = jax.lax.conv_general_dilated(
        x.astype(jnp.bfloat16), weight.astype(jnp.bfloat16),
        window_strides=(2, 2), padding=((1, 1), (1, 1)),
        dimension_numbers=("NCHW", "OIHW", "NCHW"),
        preferred_element_type=jnp.float32)
    mean = jnp.mean(y, axis=(0, 2, 3), keepdims=True)
    var = jnp.mean(y * y, axis=(0, 2, 3), keepdims=True) - mean * mean
    # Mirror the kernel's bf16 intermediate (stats were taken in f32 first).
    y = y.astype(jnp.bfloat16).astype(jnp.float32)
    y = (y - mean) * jax.lax.rsqrt(var + eps)
    y = y * gamma.reshape(1, -1, 1, 1) + beta.reshape(1, -1, 1, 1)
    if negative_slope == 0.0:
        return jnp.maximum(y, 0.0)
    return jnp.where(y >= 0.0, y, negative_slope * y)


if __name__ == "__main__":
    # Small shapes consistent with a U-Net down block.
    N, C_IN, C_OUT, H, W = 2, 4, 8, 16, 16

    key = jax.random.PRNGKey(0)
    kx, kw = jax.random.split(key)
    x = jax.random.normal(kx, (N, C_IN, H, W), dtype=jnp.float32)
    fan_in = C_IN * 4 * 4
    weight = jax.random.normal(kw, (C_OUT, C_IN, 4, 4),
                               dtype=jnp.float32) * (1.0 / fan_in) ** 0.5
    gamma = 1.0 + 0.1 * jnp.arange(C_OUT, dtype=jnp.float32)
    beta = 0.05 * jnp.arange(C_OUT, dtype=jnp.float32)

    # --- ReLU path, no dropout: must match the reference ---------------------
    out = block_forward(x, weight, gamma, beta, act="relu", use_dropout=False)
    out = jax.block_until_ready(out)
    ref = _reference(x, weight, gamma, beta, negative_slope=0.0)
    assert out.shape == (N, C_OUT, H // 2, W // 2), out.shape
    max_err = float(jnp.max(jnp.abs(out - ref)))
    assert jnp.allclose(out, ref, rtol=1e-2, atol=1e-2), max_err

    # --- LeakyReLU + Dropout(0.5): kept values equal 2x the no-dropout ref ---
    out_d = block_forward(x, weight, gamma, beta, act="leaky",
                          use_dropout=True, dropout_seed=123)
    out_d = jax.block_until_ready(out_d)
    ref_l = _reference(x, weight, gamma, beta, negative_slope=0.2)
    kept = out_d != 0.0
    frac_dropped = 1.0 - float(jnp.mean(kept.astype(jnp.float32)))
    assert 0.3 < frac_dropped < 0.7, frac_dropped
    match = jnp.abs(out_d - 2.0 * ref_l) <= (1e-2 + 1e-2 * jnp.abs(2.0 * ref_l))
    assert bool(jnp.all(jnp.where(kept, match, True)))

    print("KERNEL_OK")
</pallas_src>

<mosaic_0001>
module attributes {stable_mosaic.version = 11 : i64} {
  func.func @_conv_stats_kernel(%arg0: i32, %arg1: i32, %arg2: memref<1x8x9x16xbf16, #tpu.memory_space<vmem>>, %arg3: memref<1x1x9x16xbf16, #tpu.memory_space<vmem>>, %arg4: memref<64x128xbf16, #tpu.memory_space<vmem>>, %arg5: memref<64x128xbf16, #tpu.memory_space<vmem>>, %arg6: memref<1x1x128xf32, #tpu.memory_space<vmem>>, %arg7: memref<1x1x128xf32, #tpu.memory_space<vmem>>) attributes {dimension_semantics = [#tpu.dimension_semantics<parallel>, #tpu.dimension_semantics<parallel>], iteration_bounds = array<i64: 2, 1>, scalar_prefetch = 0 : i64, scratch_operands = 0 : i64, tpu.core_type = #tpu.core_type<tc>, window_params = [{transform_indices = @transform_0, window_bounds = array<i64: 1, 8, 9, 16>}, {transform_indices = @transform_1, window_bounds = array<i64: 1, 1, 9, 16>}, {pipeline_mode = #tpu.pipeline_mode<synchronous>, transform_indices = @transform_2, window_bounds = array<i64: 64, 128>}, {transform_indices = @transform_3, window_bounds = array<i64: 64, 128>}, {transform_indices = @transform_4, window_bounds = array<i64: 1, 1, 128>}, {transform_indices = @transform_5, window_bounds = array<i64: 1, 1, 128>}]} {
    %c0 = arith.constant 0 : index
    %c0_0 = arith.constant 0 : index
    %c0_1 = arith.constant 0 : index
    %c0_2 = arith.constant 0 : index
    %0 = vector.load %arg2[%c0, %c0_0, %c0_1, %c0_2] : memref<1x8x9x16xbf16, #tpu.memory_space<vmem>>, vector<1x8x9x16xbf16>
    %1 = vector.shape_cast %0 : vector<1x8x9x16xbf16> to vector<8x9x16xbf16>
    %c0_3 = arith.constant 0 : index
    %c0_4 = arith.constant 0 : index
    %c0_5 = arith.constant 0 : index
    %c0_6 = arith.constant 0 : index
    %2 = vector.load %arg3[%c0_3, %c0_4, %c0_5, %c0_6] : memref<1x1x9x16xbf16, #tpu.memory_space<vmem>>, vector<1x1x9x16xbf16>
    %3 = vector.shape_cast %2 : vector<1x1x9x16xbf16> to vector<1x9x16xbf16>
    %4 = tpu.concatenate %1, %3 in 0 : vector<8x9x16xbf16>, vector<1x9x16xbf16> -> vector<9x9x16xbf16>
    %5 = vector.extract_strided_slice %4 {offsets = [0, 0, 0], sizes = [8, 8, 16], strides = [1, 1, 1]} : vector<9x9x16xbf16> to vector<8x8x16xbf16>
    %6 = vector.shape_cast %5 : vector<8x8x16xbf16> to vector<64x16xbf16>
    %7 = vector.extract_strided_slice %4 {offsets = [0, 1, 0], sizes = [8, 8, 16], strides = [1, 1, 1]} : vector<9x9x16xbf16> to vector<8x8x16xbf16>
    %8 = vector.shape_cast %7 : vector<8x8x16xbf16> to vector<64x16xbf16>
    %9 = vector.extract_strided_slice %4 {offsets = [1, 0, 0], sizes = [8, 8, 16], strides = [1, 1, 1]} : vector<9x9x16xbf16> to vector<8x8x16xbf16>
    %10 = vector.shape_cast %9 : vector<8x8x16xbf16> to vector<64x16xbf16>
    %11 = vector.extract_strided_slice %4 {offsets = [1, 1, 0], sizes = [8, 8, 16], strides = [1, 1, 1]} : vector<9x9x16xbf16> to vector<8x8x16xbf16>
    %12 = vector.shape_cast %11 : vector<8x8x16xbf16> to vector<64x16xbf16>
    %13 = tpu.concatenate %6, %8, %10, %12 in 1 : vector<64x16xbf16>, vector<64x16xbf16>, vector<64x16xbf16>, vector<64x16xbf16> -> vector<64x64xbf16>
    %c0_7 = arith.constant 0 : index
    %c0_8 = arith.constant 0 : index
    %14 = vector.load %arg4[%c0_7, %c0_8] : memref<64x128xbf16, #tpu.memory_space<vmem>>, vector<64x128xbf16>
    %cst = arith.constant dense<0.000000e+00> : vector<64x128xf32>
    %15 = tpu.matmul %13, %14, %cst {dimension_numbers = #tpu.dot_dimension_numbers<[1], [0], [0], [1], [0, 0, 1, 1], [], []>} : vector<64x64xbf16>, vector<64x128xbf16>, vector<64x128xf32> -> vector<64x128xf32>
    %16 = arith.truncf %15 : vector<64x128xf32> to vector<64x128xbf16>
    %c0_9 = arith.constant 0 : index
    %c0_10 = arith.constant 0 : index
    %17 = vector.load %arg5[%c0_9, %c0_10] : memref<64x128xbf16, #tpu.memory_space<vmem>>, vector<64x128xbf16>
    tpu.vector_store %arg5[%c0_9, %c0_10], %16 {strides = array<i32>} : memref<64x128xbf16, #tpu.memory_space<vmem>>, vector<64x128xbf16>,
    %cst_11 = arith.constant dense<0.000000e+00> : vector<128xf32>
    %18 = vector.multi_reduction <add>, %15, %cst_11 [0] : vector<64x128xf32> to vector<128xf32>
    %19 = vector.shape_cast %18 : vector<128xf32> to vector<1x1x128xf32>
    %c0_12 = arith.constant 0 : index
    %c0_13 = arith.constant 0 : index
    %c0_14 = arith.constant 0 : index
    %20 = vector.load %arg6[%c0_12, %c0_13, %c0_14] : memref<1x1x128xf32, #tpu.memory_space<vmem>>, vector<1x1x128xf32>
    tpu.vector_store %arg6[%c0_12, %c0_13, %c0_14], %19 {strides = array<i32>} : memref<1x1x128xf32, #tpu.memory_space<vmem>>, vector<1x1x128xf32>,
    %21 = arith.mulf %15, %15 : vector<64x128xf32>
    %cst_15 = arith.constant dense<0.000000e+00> : vector<128xf32>
    %22 = vector.multi_reduction <add>, %21, %cst_15 [0] : vector<64x128xf32> to vector<128xf32>
    %23 = vector.shape_cast %22 : vector<128xf32> to vector<1x1x128xf32>
    %c0_16 = arith.constant 0 : index
    %c0_17 = arith.constant 0 : index
    %c0_18 = arith.constant 0 : index
    %24 = vector.load %arg7[%c0_16, %c0_17, %c0_18] : memref<1x1x128xf32, #tpu.memory_space<vmem>>, vector<1x1x128xf32>
    tpu.vector_store %arg7[%c0_16, %c0_17, %c0_18], %23 {strides = array<i32>} : memref<1x1x128xf32, #tpu.memory_space<vmem>>, vector<1x1x128xf32>,
    return
  }
  func.func @transform_0(%arg0: i32, %arg1: i32) -> (i32, i32, i32, i32) {
    %c0_i32 = arith.constant 0 : i32
    %c0_i32_0 = arith.constant 0 : i32
    %c0_i32_1 = arith.constant 0 : i32
    return %arg0, %arg1, %c0_i32, %c0_i32_0 : i32, i32, i32, i32
  }
  func.func @transform_1(%arg0: i32, %arg1: i32) -> (i32, i32, i32, i32) {
    %c1_i32 = arith.constant 1 : i32
    %0 = arith.addi %arg1, %c1_i32 : i32
    %c8_i32 = arith.constant 8 : i32
    %1 = arith.muli %0, %c8_i32 : i32
    %c0_i32 = arith.constant 0 : i32
    %c0_i32_0 = arith.constant 0 : i32
    %c0_i32_1 = arith.constant 0 : i32
    return %arg0, %1, %c0_i32, %c0_i32_0 : i32, i32, i32, i32
  }
  func.func @transform_2(%arg0: i32, %arg1: i32) -> (i32, i32) {
    %c0_i32 = arith.constant 0 : i32
    %c0_i32_0 = arith.constant 0 : i32
    %c0_i32_1 = arith.constant 0 : i32
    return %c0_i32, %c0_i32_0 : i32, i32
  }
  func.func @transform_3(%arg0: i32, %arg1: i32) -> (i32, i32) {
    %c1_i32 = arith.constant 1 : i32
    %0 = arith.muli %arg0, %c1_i32 : i32
    %1 = arith.addi %0, %arg1 : i32
    %c0_i32 = arith.constant 0 : i32
    %c0_i32_0 = arith.constant 0 : i32
    return %1, %c0_i32 : i32, i32
  }
  func.func @transform_4(%arg0: i32, %arg1: i32) -> (i32, i32, i32) {
    %c1_i32 = arith.constant 1 : i32
    %0 = arith.muli %arg0, %c1_i32 : i32
    %1 = arith.addi %0, %arg1 : i32
    %c0_i32 = arith.constant 0 : i32
    %c0_i32_0 = arith.constant 0 : i32
    %c0_i32_1 = arith.constant 0 : i32
    return %1, %c0_i32, %c0_i32_0 : i32, i32, i32
  }
  func.func @transform_5(%arg0: i32, %arg1: i32) -> (i32, i32, i32) {
    %c1_i32 = arith.constant 1 : i32
    %0 = arith.muli %arg0, %c1_i32 : i32
    %1 = arith.addi %0, %arg1 : i32
    %c0_i32 = arith.constant 0 : i32
    %c0_i32_0 = arith.constant 0 : i32
    %c0_i32_1 = arith.constant 0 : i32
    return %1, %c0_i32, %c0_i32_0 : i32, i32, i32
  }
}

</mosaic_0001>

<bundles_post_ra>
// kernel: tpu_custom_call.1
= control target key start
LH: loop header
LB: loop body
LE: loop exit
PB: predicated region body
PF: predicated region fallthrough
CT: control target
= control target key end

     0   :  { %11 = vsyncpa [#allocation3], 0  ;;  %s1568_s0 = inlined_call_operand.vmem [shape: bf16[2,9,9,16], index: 0, kind: input, shape index: {}]   ;;  %s1569_s1 = inlined_call_operand.vmem [shape: bf16[2,9,9,16], index: 1, kind: input, shape index: {}]   ;;  %s1570_s2 = inlined_call_operand.vmem [shape: bf16[64,128], index: 2, kind: input, shape index: {}]   ;;  %s1571_s3 = inlined_call_operand.hbm [shape: bf16[128,128], index: 3, kind: output, shape index: {0}]   ;;  %s1572_s4 = inlined_call_operand.hbm [shape: f32[2,1,128], index: 4, kind: output, shape index: {1}]   ;;  %s1573_s5 = inlined_call_operand.hbm [shape: f32[2,1,128], index: 5, kind: output, shape index: {2}]  }
   0x1   :  { %13 = vsyncpa [#allocation3 + $0x1], 0 }
   0x2   :  { %14 = vsyncpa [#allocation5], 0 }
   0x3   :  { %16 = vsyncpa [#allocation5 + $0x1], 0  ;;  %s1253_s18 = smov 0   ;;  %s1255_s19 = smov 0  }
   0x4   :  { %s1257_s20 = smov 0   ;;  %s1259_s21 = smov 0  }
   0x5   :  { %s1261_s22 = smov 0   ;;  %s1263_s23 = smov 0  }
   0x6 LB: > { %s930_s24 = sadd.s32 4294967295, %s1216_s23   ;;  %s1574_s25 = sadd.s32 4294967294, %s1216_s23   ;;  %s1216_s23 = sphi %s1263_s23, %s22_s23   ;;  %s1212_s22 = sphi %s1261_s22, %s1584_s22   ;;  %s1208_s21 = sphi %s1259_s21, %s1583_s21   ;;  %s1204_s20 = sphi %s1257_s20, %s1582_s20   ;;  %s1200_s19 = sphi %s1255_s19, %s1581_s19   ;;  %s1196_s18 = sphi %s1253_s18, %s1580_s18  }
   0x7   : > { %s34_s26 = sadd.s32 1, %s1212_s22  ;;  %s124_s27 = sadd.s32 1, %s1204_s20 }
   0x8   : > { %p36_p0 = scmp.ge.s32.totalorder %s34_s26, 2  ;;  %p134_p1 = scmp.ne.s32.totalorder %s1204_s20, %s1200_s19 }
   0x9   : > { %p135_p2 = scmp.eq.s32.totalorder %s930_s24, 1  ;;  %p140_p3 = scmp.ne.s32.totalorder %s1200_s19, %s1196_s18 }
   0xa   : > { %s1586_s26 = smov (%p36_p0, %s34_s26), 0  ;;  %p141_p5 = scmp.eq.s32.totalorder %s1574_s25, 1 }
   0xb   : > { %p1295_p4 = por %p135_p2, %p134_p1  ;;  %s121_s29 = ssub.s32 %s1212_s22, %s1586_s26 }
   0xc   : > { %p934_p6 = scmp.ge.s32.totalorder %s1216_s23, 1  ;;  %p122_p7 = scmp.eq.s32.totalorder %s121_s29, 0 }
   0xd   : > { %p1304_p8 = por %p141_p5, %p140_p3  ;;  %p258_p9 = scmp.lt.s32.totalorder %s1216_s23, 3 }
   0xe   : > { %s1310_s6 = scalar_select %p122_p7, %s1204_s20, %s124_s27  }
   0xf   : > { %p259_p10 = pnand %p934_p6, %p258_p9 }
  0x10   : > { %p321_p11 = scmp.lt.s32.totalorder (!%p259_p10), %s1208_s21, 1  ;;  %s1218_s12 = smov (!%p259_p10), 32  }
  0x11   : > { %262 = sbr.rel (%p259_p10) target bundleno = 357 (0x165), region = 32  ;;  %s1219_s17 = smov (!%p259_p10), 16  }
  0x12   : > { %s1220_s27 = smov (!%p259_p10), 48   ;;  %s1463_s14 = sand.u32 (!%p259_p10), 1, %s1200_s19  }
  0x13   : > { %s935_s15 = sshll.u32 (!%p259_p10), %s1463_s14, 5  ;;  %s722_s10 = scalar_lea.sflag (!%p259_p10), [#allocation3], %s1463_s14 }
  0x16   : > { %s1314_s7 = scalar_select %p321_p11, %s1208_s21, 1  ;;  %vm372_vm0 = vsmask.f32 3328  ;;  %vm373_vm1 = vsmask.f32 7440  ;;  %v966_v48 = vld [vmem:[%s1570_s2 + $0x8] sm:$0xff] }
  0x17   : > { %vm1365_vm2 = vmor %vm372_vm0, %vm373_vm1  ;;  %vm568_vm3 = vcmask 130048   ;;  %vm590_vm4 = vcmask 392192   ;;  %vm581_vm5 = vcmask 261120   ;;  %vm631_vm6 = vcmask 523264  }
  0x18   : > { %s1005_s8 = smul.u32 72, %s1314_s7 }
  0x1a   : > { %s1322_s11 = scalar_lea.vmem %s1568_s0, %s1005_s8  ;;  %s964_s13 = sadd.s32 64, %s1005_s8 }
  0x1b   : > { %v360_v0 = vld [vmem:[%s1322_s11 + $0x18] sm:$0xf]  ;;  %v1326_v1 = vld [vmem:[%s1322_s11 + $0x20] sm:$0xf]  ;;  %v356_v2 = vld [vmem:[%s1322_s11 + $0x8] sm:$0xf]  ;;  %s1393_s16 = scalar_lea.vmem %s1569_s1, %s964_s13 }
  0x1c   : > { %v432_v3 = vshrl.u32 %v1326_v1, 16  ;;  %v435_v4 = vshll.u32 %v1326_v1, 16  ;;  %v512_v5 = vunpack.c.l.b16 %v360_v0  ;;  %v513_v6 = vunpack.c.l.b16 %v1326_v1  ;;  %v358_v7 = vld [vmem:[%s1322_s11 + $0x10] sm:$0xf]  ;;  %v354_v12 = vld [vmem:[%s1322_s11] sm:$0xf] }
  0x1d   : > { %v418_v8 = vshrl.u32 %v360_v0, 16  ;;  %v421_v9 = vshll.u32 %v360_v0, 16  ;;  %v404_v10 = vshrl.u32 %v358_v7, 16  ;;  %v407_v11 = vshll.u32 %v358_v7, 16  ;;  %v363_v25 = vld [vmem:[%s1322_s11 + $0x24] sm:$0x1] }
  0x1e   : > { %v434_v13 = vrot.slane %v432_v3, 4  ;;  %v437_v14 = vrot.slane %v435_v4, 5  ;;  %v544_v15 = vpack.c.b16 %v513_v6, %v512_v5  ;;  %v510_v16 = vunpack.c.l.b16 %v356_v2  ;;  %v1351_v30 = vld [vmem:[%s1322_s11 + $0x28] sm:$0xf]  ;;  %v365_v31 = vld [vmem:[%s1322_s11 + $0x2c] sm:$0x1] }
  0x1f   : > { %v1336_v17 = vrot.slane %v418_v8, 4  ;;  %v1338_v18 = vrot.slane %v421_v9, 5  ;;  %v1340_v19 = vrot.slane %v404_v10, 4  ;;  %v1342_v20 = vrot.slane %v407_v11, 5  ;;  %v355_v36 = vld [vmem:[%s1322_s11 + $0x4] sm:$0x1] }
  0x20   : > { %v438_v21 = vor.u32 %v437_v14, %v434_v13  ;;  %549 = vrot.lane.b32.xlu1 %v544_v15, %s1218_s12  ;;  %v511_v22 = vunpack.c.l.b16 %v358_v7  ;;  %v376_v23 = vshrl.u32 %v354_v12, 16  ;;  %v379_v24 = vshll.u32 %v354_v12, 16  ;;  %v357_v45 = vld [vmem:[%s1322_s11 + $0xc] sm:$0x1]  ;;  %v366_v51 = vld [vmem:[%s1322_s11 + $0x30] sm:$0xf] }
  0x21   : > { %v424_v26 = vor.u32 %v1338_v18, %v1336_v17  ;;  %v410_v27 = vor.u32 %v1342_v20, %v1340_v19  ;;  %v390_v28 = vshrl.u32 %v356_v2, 16  ;;  %v393_v29 = vshll.u32 %v356_v2, 16  ;;  %v1373_v62 = vld [vmem:[%s1322_s11 + $0x38] sm:$0xf]  ;;  %v359_v15 = vld [vmem:[%s1322_s11 + $0x14] sm:$0x1] }
  0x22   : > { %v1354_v32 = vpack.c.b16 %v512_v5, %v511_v22  ;;  %v543_v33 = vpack.c.b16 %v511_v22, %v510_v16  ;;  %v378_v34 = vrot.slane %v376_v23, 4  ;;  %v381_v35 = vrot.slane %v379_v24, 5  ;;  %v367_v24 = vld [vmem:[%s1322_s11 + $0x34] sm:$0x1] }
  0x23   : > { %v392_v37 = vrot.slane %v390_v28, 4  ;;  %v395_v38 = vrot.slane %v393_v29, 5  ;;  %v509_v39 = vunpack.c.l.b16 %v354_v12  ;;  %v439_v40 = vrot.slane %v438_v21, 4 }
  0x24   : > { %547 = vrot.lane.b32.xlu0 %v543_v33, %s1218_s12  ;;  %v441_v41 = vshll.u32 %v363_v25, 16  ;;  %v446_v42 = vshrl.u32 %v1351_v30, 16  ;;  %v449_v43 = vshll.u32 %v1351_v30, 16  ;;  %v455_v44 = vshll.u32 %v365_v31, 16  ;;  %v361_v31 = vld [vmem:[%s1322_s11 + $0x1c] sm:$0x1] }
  0x25   : > { %v396_v46 = vor.u32 %v395_v38, %v392_v37  ;;  %v1361_v47 = vpack.c.b16 %v510_v16, %v509_v39  ;;  %v382_v49 = vor.u32 %v381_v35, %v378_v34  ;;  %v385_v50 = vshll.u32 %v355_v36, 16 }
  0x26   : > { %v443_v52 = vrot.slane %v441_v41, 5  ;;  %v448_v53 = vrot.slane %v446_v42, 4  ;;  %v451_v54 = vrot.slane %v449_v43, 5  ;;  %v457_v55 = vrot.slane %v455_v44, 5  ;;  %v370_v41 = vld [vmem:[%s1393_s16] sm:$0xf] }
  0x27   : > { %v383_v56 = vrot.slane %v382_v49, 4  ;;  %v387_v57 = vrot.slane %v385_v50, 5  ;;  %v397_v58 = vrot.slane %v396_v46, 4  ;;  %v399_v59 = vshll.u32 %v357_v45, 16  ;;  %v369_v43 = vld [vmem:[%s1322_s11 + $0x3c] sm:$0x1] }
  0x28   : > { %v444_v60 = vsel %vm1365_vm2, %v439_v40, %v443_v52  ;;  %v452_v61 = vor.u32 %v451_v54, %v448_v53  ;;  %v460_v63 = vshrl.u32 %v366_v51, 16  ;;  %v463_v0 = vshll.u32 %v366_v51, 16  ;;  %v371_v52 = vld [vmem:[%s1393_s16 + $0x4] sm:$0x1]  ;;  %s1466_s16 = scalar_lea.vmem [#allocation2], %s935_s15 }
  0x29   : > { %v1375_v2 = vunpack.c.l.b16 %v444_v60  ;;  %v388_v3 = vsel %vm1365_vm2, %v383_v56, %v387_v57  ;;  %v401_v4 = vrot.slane %v399_v59, 5  ;;  %v474_v5 = vshrl.u32 %v1373_v62, 16  ;;  %s743_s8 = sshll.u32 %s1466_s16, 4  ;;  %s1476_s8 = int_to_ptr.vmem [resolvable:$true] %s743_s8 }
  0x2a   : > { %v453_v7 = vrot.slane %v452_v61, 4  ;;  %v521_v8 = vunpack.c.l.b16 %v388_v3  ;;  %v462_v9 = vrot.slane %v460_v63, 4  ;;  %v465_v10 = vrot.slane %v463_v0, 5 }
  0x2b   : > { %v402_v11 = vsel %vm1365_vm2, %v397_v58, %v401_v4  ;;  %v476_v12 = vrot.slane %v474_v5, 4  ;;  %v477_v13 = vshll.u32 %v1373_v62, 16  ;;  %v514_v14 = vunpack.c.l.b16 %v1351_v30 }
  0x2c   : > { %v458_v16 = vsel %vm1365_vm2, %v453_v7, %v457_v55  ;;  %v522_v21 = vunpack.c.l.b16 %v402_v11  ;;  %v466_v22 = vor.u32 %v465_v10, %v462_v9  ;;  %v515_v23 = vunpack.c.l.b16 %v366_v51 }
  0x2d   : > { %v526_v25 = vunpack.c.l.b16 %v458_v16  ;;  %v479_v28 = vrot.slane %v477_v13, 5  ;;  %v516_v29 = vunpack.c.l.b16 %v1373_v62  ;;  %v1398_v30 = vpack.c.b16 %v514_v14, %v513_v6  ;;  %v965_v13 = vld [vmem:[%s1570_s2] sm:$0xff] }
  0x2e   : > { %v529_v33 = vpack.c.b16 %v522_v21, %v521_v8  ;;  %v545_v34 = vpack.c.b16 %v515_v23, %v514_v14  ;;  %v411_v35 = vrot.slane %v410_v27, 4  ;;  %v413_v36 = vshll.u32 %v359_v15, 16 }
  0x2f   : > { %v531_v37 = vpack.c.b16 %v526_v25, %v1375_v2  ;;  %v1405_v38 = vpack.c.b16 %v516_v29, %v515_v23  ;;  %v467_v39 = vrot.slane %v466_v22, 4  ;;  %v469_v40 = vshll.u32 %v367_v24, 16 }
  0x30   : > { %533 = vrot.lane.b32.xlu0 %v529_v33, %s1219_s17  ;;  %551 = vrot.lane.b32.xlu2 %v545_v34, %s1218_s12  ;;  %v415_v1 = vrot.slane %v413_v36, 5  ;;  %v425_v6 = vrot.slane %v424_v26, 4  ;;  %v427_v19 = vshll.u32 %v361_v31, 16  ;;  %v488_v20 = vshrl.u32 %v370_v41, 16 }
  0x31   : > { %537 = vrot.lane.b32.xlu1 %v531_v37, %s1219_s17  ;;  %v471_v27 = vrot.slane %v469_v40, 5  ;;  %v491_v42 = vshll.u32 %v370_v41, 16  ;;  %v480_v49 = vor.u32 %v479_v28, %v476_v12  ;;  %v483_v54 = vshll.u32 %v369_v43, 16  ;;  %v968_v12 = vld [vmem:[%s1570_s2 + $0x18] sm:$0xff] }
  0x32   : > { %v416_v44 = vsel %vm1365_vm2, %v411_v35, %v415_v1  ;;  %v429_v45 = vrot.slane %v427_v19, 5  ;;  %v490_v46 = vrot.slane %v488_v20, 4  ;;  %v497_v58 = vshll.u32 %v371_v52, 16  ;;  %644 = vmatpush.bf16.msra.mxu0 %v968_v12  ;;  %994 = vmatpush.bf16.msra.mxu2 %v968_v12 }
  0x33   : > { %v523_v50 = vunpack.c.l.b16 %v416_v44  ;;  %v472_v51 = vsel %vm1365_vm2, %v467_v39, %v471_v27  ;;  %v493_v17 = vrot.slane %v491_v42, 5  ;;  %v481_v53 = vrot.slane %v480_v49, 4  ;;  %993 = vmatpush.bf16.msra.mxu1 %v968_v12  ;;  %995 = vmatpush.bf16.msra.mxu3 %v968_v12 }
  0x34   : > { %v527_v18 = vunpack.c.l.b16 %v472_v51  ;;  %v430_v26 = vsel %vm1365_vm2, %v425_v6, %v429_v45  ;;  %v485_v59 = vrot.slane %v483_v54, 5  ;;  %v542_v63 = vunpack.c.l.b16 %v370_v41 }
  0x35   : > { %v556_v55 = vpack.c.b16 %v523_v50, %v522_v21  ;;  %v524_v56 = vunpack.c.l.b16 %v430_v26  ;;  %v494_v60 = vor.u32 %v493_v17, %v490_v46  ;;  %v499_v4 = vrot.slane %v497_v58, 5 }
  0x36   : > { %v558_v57 = vpack.c.b16 %v527_v18, %v526_v25  ;;  %v486_v62 = vsel %vm1365_vm2, %v481_v53, %v485_v59  ;;  %v546_v7 = vpack.c.b16 %v542_v63, %v516_v29 }
  0x37   : > { %v530_v61 = vpack.c.b16 %v524_v56, %v523_v50  ;;  %v528_v0 = vunpack.c.l.b16 %v486_v62  ;;  %v495_v3 = vrot.slane %v494_v60, 4  ;;  %v557_v5 = vpack.c.b16 %v1375_v2, %v524_v56  ;;  %v967_v2 = vld [vmem:[%s1570_s2 + $0x10] sm:$0xff] }
  0x38   : > { %564 = vrot.lane.b32.xlu0 %v558_v57, %s1220_s27  ;;  %645 = vmatpush.bf16.msra.mxu0 %v967_v2 }
  0x39   : > { %560 = vrot.lane.b32.xlu1 %v556_v55, %s1220_s27  ;;  %535 = vrot.lane.b32.xlu2 %v530_v61, %s1219_s17  ;;  %v532_v8 = vpack.c.b16 %v528_v0, %v527_v18  ;;  %v500_v9 = vsel %vm1365_vm2, %v495_v3, %v499_v4 }
  0x3a   : > { %v555_v10 = vunpack.c.l.b16 %v500_v9  ;;  %997 = vmatpush.bf16.msra.mxu2 %v967_v2  ;;  %996 = vmatpush.bf16.msra.mxu1 %v967_v2 }
  0x3b   : > { %998 = vmatpush.bf16.msra.mxu3 %v967_v2 }
  0x3c   : > { %v559_v11 = vpack.c.b16 %v555_v10, %v528_v0  ;;  %646 = vmatpush.bf16.msra.mxu0 %v966_v48 }
  0x3e   : > { %1000 = vmatpush.bf16.msra.mxu2 %v966_v48  ;;  %999 = vmatpush.bf16.msra.mxu1 %v966_v48 }
  0x3f   : > { %1001 = vmatpush.bf16.msra.mxu3 %v966_v48 }
  0x40   : > { %562 = vrot.lane.b32.xlu0 %v557_v5, %s1220_s27  ;;  %647 = vmatpush.bf16.msra.mxu0 %v965_v13 }
  0x41   : > { %553 = vrot.lane.b32.xlu1 %v546_v7, %s1218_s12  ;;  %539 = vrot.lane.b32.xlu2 %v532_v8, %s1219_s17  ;;  %s969_s17 = sshll.u32 %s1208_s21, 5 }
  0x42   : > { %1003 = vmatpush.bf16.msra.mxu2 %v965_v13  ;;  %1002 = vmatpush.bf16.msra.mxu1 %v965_v13  ;;  %s742_s7 = scalar_lea.hbm %s1571_s3, %s969_s17  ;;  %s1098_s17 = scalar_lea.hbm %s1571_s3, 64 }
  0x43   : > { %1004 = vmatpush.bf16.msra.mxu3 %v965_v13  ;;  %s745_s9 = sshll.u32 %s742_s7, 4  ;;  %s746_s9 = int_to_ptr.hbm [resolvable:$true] %s745_s9 }
  0x44   : > { %s1092_s11 = sshra.s32 %s746_s9, 4  ;;  %s1093_s11 = int_to_ptr.hbm [resolvable:$true] %s1092_s11 }
  0x45   : > { %s1094_s12 = scalar_lea.hbm %s1093_s11, 32  ;;  %p1099_p1 = scmp.lt.s32.totalorder %s1093_s11, %s1571_s3 }
  0x46   : > { %p1095_p12 = scmp.ne.s32.totalorder %s1093_s11, %s1094_s12  ;;  %p1100_p2 = scmp.lt.s32.totalorder %s1098_s17, %s1094_s12 }
  0x48   : > { %p1096_p13 = pnand %p1095_p12, %p1295_p4  ;;  %p1101_p3 = por %p1100_p2, %p1099_p1 }
  0x49   : > { %566 = vrot.lane.b32.xlu2 %v559_v11, %s1220_s27 }
  0x4a   : > { %p1097_p0 = pneg %p1096_p13 }
  0x4c   : > { %p1102_p5 = pnand %p1101_p3, %p1097_p0 }
  0x8a   : > { %v552_v14 = vpop.permute.xlu2 %551 }
  0x92   : > { %v550_v16 = vpop.permute.xlu1 %549 }
  0x93   : > { %v536_v21 = vpop.permute.xlu2 %535 }
  0x96   : > { %v548_v15 = vpop.permute.xlu0 %547 }
  0x9b   : > { %v540_v28 = vpop.permute.xlu2 %539 }
  0x9c   : > { %v580_v40 = vsel %vm568_vm3, %v1405_v38, %v540_v28 }
  0xa2   : > { %v534_v22 = vpop.permute.xlu0 %533 }
  0xa3   : > { %v538_v23 = vpop.permute.xlu1 %537  ;;  %v571_v25 = vsel %vm568_vm3, %v1361_v47, %v534_v22  ;;  %v574_v47 = vsel %vm568_vm3, %v1354_v32, %v536_v21  ;;  %v567_v37 = vpop.permute.xlu2 %566 }
  0xa4   : > { %v577_v24 = vsel %vm568_vm3, %v1398_v30, %v538_v23  ;;  %v583_v34 = vsel %vm581_vm5, %v571_v25, %v548_v15  ;;  %v585_v39 = vsel %vm581_vm5, %v574_v47, %v550_v16 }
  0xa5   : > { %v587_v31 = vsel %vm581_vm5, %v577_v24, %v552_v14 }
  0xaa   : > { %v565_v29 = vpop.permute.xlu0 %564 }
  0xab   : > { %v561_v33 = vpop.permute.xlu1 %560  ;;  %v596_v35 = vsel %vm590_vm4, %v587_v31, %v565_v29 }
  0xac   : > { %v592_v36 = vsel %vm590_vm4, %v583_v34, %v561_v33  ;;  %956 = vmatmul.msk.bf16.vlgmr.msra.gmra.mxu2 %vm631_vm6, %v596_v35 }
  0xad   : > { %954 = vmatmul.msk.bf16.vlgmr.msra.gmra.mxu0 %vm631_vm6, %v592_v36 }
  0xb2   : > { %v563_v30 = vpop.permute.xlu0 %562 }
  0xb3   : > { %v554_v41 = vpop.permute.xlu1 %553  ;;  %v594_v1 = vsel %vm590_vm4, %v585_v39, %v563_v30 }
  0xb4   : > { %v589_v6 = vsel %vm581_vm5, %v580_v40, %v554_v41  ;;  %955 = vmatmul.msk.bf16.vlgmr.msra.gmra.mxu1 %vm631_vm6, %v594_v1 }
  0xb5   : > { %v598_v19 = vsel %vm590_vm4, %v589_v6, %v567_v37 }
  0xb6   : > { %957 = vmatmul.msk.bf16.vlgmr.msra.gmra.mxu3 %vm631_vm6, %v598_v19 }
 0x12a   : > { %v649_v20 = vpop.f32.mrf.mxu0 }
 0x12b   : > { %v699_v44 = vmul.f32 %v649_v20, %v649_v20 }
 0x12f   : > { %v659_v32 = vpop.f32.mrf.mxu2 }
 0x130   : > { %v703_v56 = vmul.f32 %v659_v32, %v659_v32 }
 0x131   : > { %v654_v27 = vpop.f32.mrf.mxu1 }
 0x132   : > { %v651_v38 = vpop.f32.mrf.mxu0  ;;  %v701_v51 = vmul.f32 %v654_v27, %v654_v27 }
 0x133   : > { %v973_v42 = vpack.c.bf16 %v651_v38, %v649_v20  ;;  %v700_v43 = vmul.f32 %v651_v38, %v651_v38  ;;  %v685_v45 = vadd.f32 %v651_v38, %v649_v20 }
 0x135   : > { %974 = vst [vmem:[%s1466_s16] sm:$0xff] %v973_v42   ;;  %v707_v46 = vadd.f32 %v700_v43, %v699_v44  ;;  %v686_v50 = vadd.f32 %v685_v45, %v654_v27 }
 0x137   : > { %v661_v49 = vpop.f32.mrf.mxu2  ;;  %v708_v26 = vadd.f32 %v707_v46, %v701_v51 }
 0x138   : > { %v983_v52 = vpack.c.bf16 %v661_v49, %v659_v32  ;;  %v704_v59 = vmul.f32 %v661_v49, %v661_v49 }
 0x139   : > { %v664_v17 = vpop.f32.mrf.mxu3  ;;  %v656_v18 = vpop.f32.mrf.mxu1 }
 0x13a   : > { %991 = vst [vmem:[%s1466_s16 + $0x10] sm:$0xff] %v983_v52   ;;  %v978_v53 = vpack.c.bf16 %v656_v18, %v654_v27  ;;  %v687_v54 = vadd.f32 %v686_v50, %v656_v18  ;;  %v702_v55 = vmul.f32 %v656_v18, %v656_v18  ;;  %v705_v62 = vmul.f32 %v664_v17, %v664_v17 }
 0x13c   : > { %990 = vst [vmem:[%s1466_s16 + $0x8] sm:$0xff] %v978_v53   ;;  %v688_v57 = vadd.f32 %v687_v54, %v659_v32  ;;  %v709_v58 = vadd.f32 %v708_v26, %v702_v55 }
 0x13e   : > { %v710_v60 = vadd.f32 %v709_v58, %v703_v56  ;;  %v689_v61 = vadd.f32 %v688_v57, %v661_v49 }
 0x140   : > { %v690_v63 = vadd.f32 %v689_v61, %v664_v17  ;;  %v711_v0 = vadd.f32 %v710_v60, %v704_v59 }
 0x141   : > { %v666_v3 = vpop.f32.mrf.mxu3 }
 0x142   : > { %v988_v4 = vpack.c.bf16 %v666_v3, %v664_v17  ;;  %v691_v5 = vadd.f32 %v690_v63, %v666_v3  ;;  %v706_v7 = vmul.f32 %v666_v3, %v666_v3  ;;  %v712_v8 = vadd.f32 %v711_v0, %v705_v62 }
 0x144   : > { %992 = vst [vmem:[%s1466_s16 + $0x18] sm:$0xff] %v988_v4   ;;  %v692_v9 = vrot.slane %v691_v5, 4  ;;  %v713_v10 = vadd.f32 %v712_v8, %v706_v7 }
 0x145   : > { %1105 = shalt.err (!%p1102_p5)
}
 0x146   : > { %s1221_s16 = smov 64   ;;  %s1222_s7 = smov 4   ;;  %v693_v11 = vadd.f32 %v692_v9, %v691_v5  ;;  %v714_v12 = vrot.slane %v713_v10, 4 }
 0x147   : > { %1007 = dma.vmem_to_hbm [thread:$0]  (%p1295_p4), %s1476_s8, 512, %s746_s9, %s722_s10, %s1221_s16, %s1221_s16, %s1222_s7  }
 0x148   : > { %v694_v2 = vrot.slane %v693_v11, 2  ;;  %v715_v48 = vadd.f32 %v714_v12, %v713_v10  ;;  %s758_s13 = scalar_lea.hbm %s1572_s4, %s1208_s21  ;;  %s1497_s15 = sand.u32 1, %s930_s24  }
 0x149   : > { %s772_s29 = scalar_lea.hbm %s1573_s5, %s1208_s21  ;;  %s308_s25 = scalar_lea.vmem [#allocation4], %s1463_s14 }
 0x14a   : > { %v695_v13 = vadd.f32 %v694_v2, %v693_v11  ;;  %v716_v14 = vrot.slane %v715_v48, 2  ;;  %s1504_s8 = sshll.u32 %s308_s25, 4  ;;  %s1506_s9 = sshll.u32 %s758_s13, 4  ;;  %s761_s8 = int_to_ptr.vmem [resolvable:$true] %s1504_s8  ;;  %s763_s9 = int_to_ptr.hbm [resolvable:$true] %s1506_s9 }
 0x14b   : > { %s314_s10 = scalar_lea.vmem [#allocation6], %s1463_s14  ;;  %s1511_s16 = sshll.u32 %s772_s29, 4  ;;  %s777_s16 = int_to_ptr.hbm [resolvable:$true] %s1511_s16 }
 0x14c   : > { %v717_v15 = vadd.f32 %v716_v14, %v715_v48  ;;  %v696_v16 = vrot.slane %v695_v13, 1  ;;  %s1509_s24 = sshll.u32 %s314_s10, 4  ;;  %s727_s21 = scalar_lea.sflag [#allocation5], %s1497_s15  ;;  %s775_s24 = int_to_ptr.vmem [resolvable:$true] %s1509_s24 }
 0x14d   : > { %s1120_s7 = sshra.s32 %s763_s9, 4  ;;  %s1126_s13 = scalar_lea.hbm %s1572_s4, 2  ;;  %s1121_s7 = int_to_ptr.hbm [resolvable:$true] %s1120_s7 }
 0x14e   : > { %v697_v21 = vadd.f32 %v696_v16, %v695_v13  ;;  %v718_v22 = vrot.slane %v717_v15, 1  ;;  %s1122_s11 = scalar_lea.hbm %s1121_s7, 1  ;;  %p1127_p10 = scmp.lt.s32.totalorder %s1121_s7, %s1572_s4 }
 0x14f   : > { %p1123_p6 = scmp.ne.s32.totalorder %s1121_s7, %s1122_s11  ;;  %p1128_p11 = scmp.lt.s32.totalorder %s1126_s13, %s1122_s11 }
 0x150   : > { %698 = vst [vmem:[%s308_s25] sm:$0x1] %v697_v21  ;;  %v719_v23 = vadd.f32 %v718_v22, %v717_v15 }
 0x151   : > { %p1124_p7 = pnand %p1123_p6, %p1295_p4  ;;  %p1129_p12 = por %p1128_p11, %p1127_p10 }
 0x153   : > { %p1125_p9 = pneg %p1124_p7 }
 0x155   : > { %p1130_p13 = pnand %p1129_p12, %p1125_p9 }
 0x157   : > { %1133 = shalt.err (!%p1130_p13)
}
 0x158   : > { %1008 = dma.vmem_to_hbm [thread:$0]  (%p1295_p4), %s761_s8, 16, %s763_s9, %s727_s21   ;;  %720 = vst [vmem:[%s314_s10] sm:$0x1] %v719_v23 }
 0x159   : > { %s1148_s25 = sshra.s32 %s777_s16, 4  ;;  %s1154_s11 = scalar_lea.hbm %s1573_s5, 2  ;;  %s1149_s25 = int_to_ptr.hbm [resolvable:$true] %s1148_s25 }
 0x15a   : > { %s1150_s15 = scalar_lea.hbm %s1149_s25, 1  ;;  %p1155_p3 = scmp.lt.s32.totalorder %s1149_s25, %s1573_s5 }
 0x15b   : > { %p1151_p0 = scmp.ne.s32.totalorder %s1149_s25, %s1150_s15  ;;  %p1156_p5 = scmp.lt.s32.totalorder %s1154_s11, %s1150_s15 }
 0x15d   : > { %p1152_p1 = pnand %p1151_p0, %p1295_p4  ;;  %p1157_p6 = por %p1156_p5, %p1155_p3 }
 0x15f   : > { %p1153_p2 = pneg %p1152_p1 }
 0x161   : > { %p1158_p7 = pnand %p1157_p6, %p1153_p2 }
 0x163   : > { %1161 = shalt.err (!%p1158_p7)
}
 0x164   : > { %1009 = dma.vmem_to_hbm [thread:$0]  (%p1295_p4), %s775_s24, 16, %s777_s16, %s727_s21  }
 0x165 PF: > { %p1024_p9 = scmp.ge.s32.totalorder %s1216_s23, 2  ;;  %s788_s8 = sand.u32 1, %s1196_s18  }
 0x166   : > { %s789_s9 = scalar_lea.sflag [#allocation3], %s788_s8 }
 0x167   : > { %p1014_p10 = pnand %p1024_p9, %p1304_p8 }
 0x169   : > { %p1015_p11 = pneg %p1014_p10 }
 0x16b   : > { %1187 = dma.done.wait (%p1015_p11), %s789_s9, 512  }
 0x16c   : > { %1189 = vsyncadd (%p1015_p11), %s789_s9, 4294966784  ;;  %s1579_s10 = sadd.s32 4294967294, %s1216_s23  }
 0x16d   : > { %s798_s28 = sand.u32 1, %s1579_s10  }
 0x16e   : > { %s799_s13 = scalar_lea.sflag [#allocation5], %s798_s28 }
 0x16f   : > { %1191 = dma.done.wait (%p1015_p11), %s799_s13, 32  }
 0x170   : > { %1193 = vsyncadd (%p1015_p11), %s799_s13, 4294967264  ;;  %s22_s23 = sadd.s32 1, %s1216_s23   ;;  %s1580_s18 = smov %s1200_s19 }
 0x171   : > { %p19_p4 = scmp.ge.s32.totalorder %s22_s23, 4   ;;  %s1581_s19 = smov %s1204_s20 }
 0x172   : > { %s1582_s20 = smov %s1310_s6  ;;  %s1583_s21 = smov %s1212_s22 }
 0x173   : > { %s1584_s22 = smov %s1586_s26  ;;  %21 = sbr.rel (!%p19_p4) target bundleno = 6 (0x6), region = 102 }
 0x178   :  { %813 = vsyncpa [#allocation3], 1 }
 0x179   :  { %815 = vsyncpa [#allocation3 + $0x1], 1 }
 0x17a   :  { %816 = vsyncpa [#allocation5], 1 }
 0x17b   :  { %818 = vsyncpa [#allocation5 + $0x1], 1 }

</bundles_post_ra>
